<compile_context>
chip_gen: v7x
topology: tpu7x:2x2x1
jax: 0.10.0
libtpu: 0.0.40
codegen_flags: <defaults>
</compile_context>

<pallas_src>
import functools

import jax
import jax.numpy as jnp
from jax.experimental import pallas as pl
from jax.experimental.pallas import tpu as pltpu

EPS = 1e-5          # BatchNorm2d default eps
CIN = 3
COUT = 8
NCONV = 4
CTOT = NCONV * COUT  # 32 fused output channels (4 branches x 8)


def _conv_fma(x, w):
    """(CTOT, CIN) x (CIN, T) -> (CTOT, T) as CIN broadcast-FMAs on the VPU."""
    acc = w[:, 0:1] * x[0:1, :]
    for k in range(1, CIN):
        acc = acc + w[:, k:k + 1] * x[k:k + 1, :]
    return acc


def _stats_kernel(x_ref, w_ref, s_ref, m2_ref, *, tile_m, rem, ragged, n_tiles):
    """Per-(batch, tile) partial stats of the bias-free fused conv output.

    Emits per-tile sum and per-tile M2 (sum of squared deviations from the tile
    mean); the global merge is done in the wrapper (tiny).  Only the final tile
    pays for the out-of-bounds lane mask.
    """
    x = x_ref[0]                      # (CIN, T)  channels on sublanes, pixels on lanes
    w = w_ref[...]                    # (CTOT, CIN)
    z = _conv_fma(x, w)               # bias-free conv; bias cancels in train-mode BN

    def emit(zm, count, mask=None):
        s_k = jnp.sum(zm, axis=1, keepdims=True)        # (CTOT, 1)
        mean_k = s_k * (1.0 / count)
        d2 = (z - mean_k) * (z - mean_k)
        if mask is not None:
            d2 = jnp.where(mask, d2, 0.0)
        s_ref[0, 0] = s_k
        m2_ref[0, 0] = jnp.sum(d2, axis=1, keepdims=True)

    if not ragged:
        emit(z, tile_m)
        return

    t = pl.program_id(1)
    is_last = t == n_tiles - 1

    @pl.when(jnp.logical_not(is_last))
    def _():
        emit(z, tile_m)

    @pl.when(is_last)
    def _():
        # Only the final tile of each batch is partial: mask garbage lanes.
        pos = jax.lax.broadcasted_iota(jnp.int32, (1, tile_m), 1)
        mask = pos < rem
        emit(jnp.where(mask, z, 0.0), rem, mask)


def _combine_kernel(x_ref, w_ref, b_ref, o_ref):
    x = x_ref[0]                      # (CIN, T)
    w = w_ref[...]                    # (CTOT, CIN)  BN-folded weights
    bb = b_ref[...]                   # (CTOT, 1)    BN-folded biases
    y = _conv_fma(x, w) + bb          # (CTOT, T) = the 4 normalized conv outputs, stacked
    o_ref[0] = (y[0 * COUT:1 * COUT, :] * y[1 * COUT:2 * COUT, :]
                + y[2 * COUT:3 * COUT, :] * y[3 * COUT:4 * COUT, :])


def model_forward(x_nchw, weights, biases, gammas, betas, *, tile_cap=16384):
    """Forward of the PyTorch Model (train-mode BN). x: (N,3,H,W) -> (N,8,H+2,W+2)."""
    del biases  # conv bias cancels exactly under train-mode BatchNorm (kept for API parity)
    assert tile_cap % 128 == 0

    n, cin, h, w = x_nchw.shape
    assert cin == CIN
    hp, wp = h + 2, w + 2
    hw = hp * wp

    # Spatial zero-pad (padding=1 of a 1x1 conv); keep NCHW so reshapes are free views.
    # TODO(synk): handle this border analytically (see header) to drop this HBM pass.
    x_pad = jnp.pad(x_nchw, ((0, 0), (0, 0), (1, 1), (1, 1)))
    x_flat = x_pad.reshape(n, CIN, hw)                  # free view

    # Lane-dense spatial tile, large enough to amortize per-grid-step overhead,
    # small enough for v7x's 64 MiB VMEM (intermediates ~(32, tile_m) f32).
    tile_m = min(tile_cap, 128 * pl.cdiv(hw, 128))
    n_tiles = pl.cdiv(hw, tile_m)
    rem = hw - (n_tiles - 1) * tile_m                   # pixels in the final (partial) tile
    ragged = rem != tile_m

    w_all = weights.reshape(CTOT, CIN).astype(jnp.float32)
    g_all = gammas.reshape(CTOT, 1).astype(jnp.float32)
    be_all = betas.reshape(CTOT, 1).astype(jnp.float32)

    x_spec = pl.BlockSpec((1, CIN, tile_m), lambda b, t: (b, 0, t))
    w_spec = pl.BlockSpec((CTOT, CIN), lambda b, t: (0, 0))
    v_spec = pl.BlockSpec((CTOT, 1), lambda b, t: (0, 0))
    stat_spec = pl.BlockSpec((1, 1, CTOT, 1), lambda b, t: (b, t, 0, 0))

    cparams = pltpu.CompilerParams(
        dimension_semantics=("parallel", "parallel"),
        vmem_limit_bytes=32 * 1024 * 1024)

    # ---- Pass 1: per-(batch, tile) partial statistics (fully parallel) ----
    s_bt, m2_bt = pl.pallas_call(
        functools.partial(_stats_kernel, tile_m=tile_m, rem=rem,
                          ragged=ragged, n_tiles=n_tiles),
        grid=(n, n_tiles),
        in_specs=[x_spec, w_spec],
        out_specs=(stat_spec, stat_spec),
        out_shape=(jax.ShapeDtypeStruct((n, n_tiles, CTOT, 1), jnp.float32),
                   jax.ShapeDtypeStruct((n, n_tiles, CTOT, 1), jnp.float32)),
        compiler_params=cparams,
    )(x_flat, w_all)

    # ---- Tiny wrapper-side parallel-variance merge + BN fold (32 channels) ----
    counts = jnp.full((n_tiles,), float(tile_m), dtype=jnp.float32)
    if ragged:
        counts = counts.at[-1].set(float(rem))
    counts_b = counts.reshape(1, n_tiles, 1, 1)
    n_tot = float(n * hw)
    mean_z = jnp.sum(s_bt, axis=(0, 1)) / n_tot                         # (CTOT, 1)
    mean_bt = s_bt / counts_b
    m2_tot = (jnp.sum(m2_bt, axis=(0, 1))
              + jnp.sum(counts_b * jnp.square(mean_bt - mean_z), axis=(0, 1)))
    var = m2_tot / n_tot                                                # biased variance
    a = g_all * jax.lax.rsqrt(var + EPS)                                # gamma / sqrt(var+eps)
    w_eff = a * w_all                                                   # (CTOT, CIN)
    b_eff = be_all - a * mean_z                                         # (CTOT, 1)

    # ---- Pass 2: recompute conv, normalize, combine, lane-dense write ----
    out = pl.pallas_call(
        _combine_kernel,
        grid=(n, n_tiles),
        in_specs=[x_spec, w_spec, v_spec],
        out_specs=pl.BlockSpec((1, COUT, tile_m), lambda b, t: (b, 0, t)),
        out_shape=jax.ShapeDtypeStruct((n, COUT, hw), jnp.float32),
        compiler_params=cparams,
    )(x_flat, w_eff, b_eff)

    return out.reshape(n, COUT, hp, wp)                                 # free view


def reference_forward(x, weights, biases, gammas, betas):
    """Pure-JAX reference matching the PyTorch module in train mode."""
    xp = jnp.pad(x, ((0, 0), (0, 0), (1, 1), (1, 1)))
    ys = []
    for i in range(NCONV):
        y = jnp.einsum("oc,nchw->nohw", weights[i], xp) + biases[i][None, :, None, None]
        mean = jnp.mean(y, axis=(0, 2, 3), keepdims=True)
        var = jnp.var(y, axis=(0, 2, 3), keepdims=True)
        ys.append((y - mean) * jax.lax.rsqrt(var + EPS)
                  * gammas[i][None, :, None, None] + betas[i][None, :, None, None])
    return ys[0] * ys[1] + ys[2] * ys[3]


def _check(x, weights, biases, gammas, betas, **kw):
    y = model_forward(x, weights, biases, gammas, betas, **kw)
    jax.block_until_ready(y)
    n, _, h, w = x.shape
    assert y.shape == (n, COUT, h + 2, w + 2), y.shape
    y_ref = reference_forward(x, weights, biases, gammas, betas)
    err = float(jnp.max(jnp.abs(y - y_ref)))
    assert jnp.allclose(y, y_ref, rtol=2e-3, atol=2e-3), err


if __name__ == "__main__":
    key = jax.random.PRNGKey(0)
    k_x, k_w, k_b = jax.random.split(key, 3)

    # small shapes consistent with the module (Conv2d(3, 8, 1, padding=1))
    N, H, W = 2, 16, 16
    x = jax.random.normal(k_x, (N, CIN, H, W), dtype=jnp.float32)

    bound = 1.0 / jnp.sqrt(float(CIN))
    weights = jax.random.uniform(
        k_w, (NCONV, COUT, CIN), minval=-bound, maxval=bound, dtype=jnp.float32)
    biases = jax.random.uniform(
        k_b, (NCONV, COUT), minval=-bound, maxval=bound, dtype=jnp.float32)
    gammas = jnp.ones((NCONV, COUT), dtype=jnp.float32)   # BN weight default
    betas = jnp.zeros((NCONV, COUT), dtype=jnp.float32)   # BN bias default

    # 1) default tiling: single (partial) tile per batch.
    _check(x, weights, biases, gammas, betas)
    # 2) forced small tile cap: multi-tile grid + ragged final tile path.
    _check(x, weights, biases, gammas, betas, tile_cap=256)
    # 3) divisible case: dense (unmasked) stats path.
    x3 = jax.random.normal(k_x, (1, CIN, 14, 14), dtype=jnp.float32)
    _check(x3, weights, biases, gammas, betas, tile_cap=256)

    print("KERNEL_OK")
</pallas_src>

<mosaic_0001>
module attributes {stable_mosaic.version = 11 : i64} {
  func.func @_stats_kernel(%arg0: i32, %arg1: i32, %arg2: memref<1x3x384xf32, #tpu.memory_space<vmem>>, %arg3: memref<32x3xf32, #tpu.memory_space<vmem>>, %arg4: memref<1x1x32x1xf32, #tpu.memory_space<vmem>>, %arg5: memref<1x1x32x1xf32, #tpu.memory_space<vmem>>) attributes {dimension_semantics = [#tpu.dimension_semantics<parallel>, #tpu.dimension_semantics<parallel>], iteration_bounds = array<i64: 2, 1>, scalar_prefetch = 0 : i64, scratch_operands = 0 : i64, tpu.core_type = #tpu.core_type<tc>, window_params = [{transform_indices = @transform_0, window_bounds = array<i64: 1, 3, 384>}, {pipeline_mode = #tpu.pipeline_mode<synchronous>, transform_indices = @transform_1, window_bounds = array<i64: 32, 3>}, {transform_indices = @transform_2, window_bounds = array<i64: 1, 1, 32, 1>}, {transform_indices = @transform_3, window_bounds = array<i64: 1, 1, 32, 1>}]} {
    %c0 = arith.constant 0 : index
    %c0_0 = arith.constant 0 : index
    %c0_1 = arith.constant 0 : index
    %0 = vector.load %arg2[%c0, %c0_0, %c0_1] : memref<1x3x384xf32, #tpu.memory_space<vmem>>, vector<1x3x384xf32>
    %1 = vector.shape_cast %0 : vector<1x3x384xf32> to vector<3x384xf32>
    %c0_2 = arith.constant 0 : index
    %c0_3 = arith.constant 0 : index
    %2 = vector.load %arg3[%c0_2, %c0_3] : memref<32x3xf32, #tpu.memory_space<vmem>>, vector<32x3xf32>
    %3 = vector.extract_strided_slice %2 {offsets = [0, 0], sizes = [32, 1], strides = [1, 1]} : vector<32x3xf32> to vector<32x1xf32>
    %4 = vector.extract_strided_slice %1 {offsets = [0, 0], sizes = [1, 384], strides = [1, 1]} : vector<3x384xf32> to vector<1x384xf32>
    %5 = vector.broadcast %3 : vector<32x1xf32> to vector<32x384xf32>
    %6 = vector.broadcast %4 : vector<1x384xf32> to vector<32x384xf32>
    %7 = arith.mulf %5, %6 : vector<32x384xf32>
    %8 = vector.extract_strided_slice %2 {offsets = [0, 1], sizes = [32, 1], strides = [1, 1]} : vector<32x3xf32> to vector<32x1xf32>
    %9 = vector.extract_strided_slice %1 {offsets = [1, 0], sizes = [1, 384], strides = [1, 1]} : vector<3x384xf32> to vector<1x384xf32>
    %10 = vector.broadcast %8 : vector<32x1xf32> to vector<32x384xf32>
    %11 = vector.broadcast %9 : vector<1x384xf32> to vector<32x384xf32>
    %12 = arith.mulf %10, %11 : vector<32x384xf32>
    %13 = arith.addf %7, %12 : vector<32x384xf32>
    %14 = vector.extract_strided_slice %2 {offsets = [0, 2], sizes = [32, 1], strides = [1, 1]} : vector<32x3xf32> to vector<32x1xf32>
    %15 = vector.extract_strided_slice %1 {offsets = [2, 0], sizes = [1, 384], strides = [1, 1]} : vector<3x384xf32> to vector<1x384xf32>
    %16 = vector.broadcast %14 : vector<32x1xf32> to vector<32x384xf32>
    %17 = vector.broadcast %15 : vector<1x384xf32> to vector<32x384xf32>
    %18 = arith.mulf %16, %17 : vector<32x384xf32>
    %19 = arith.addf %13, %18 : vector<32x384xf32>
    %c0_i32 = arith.constant 0 : i32
    %20 = arith.cmpi eq, %arg1, %c0_i32 : i32
    %true = arith.constant true
    %21 = arith.xori %20, %true : i1
    %22 = arith.extui %21 : i1 to i32
    %c0_i32_4 = arith.constant 0 : i32
    %23 = arith.cmpi ne, %22, %c0_i32_4 : i32
    scf.if %23 {
      %cst = arith.constant dense<0.000000e+00> : vector<32xf32>
      %26 = vector.multi_reduction <add>, %19, %cst [1] : vector<32x384xf32> to vector<32xf32>
      %27 = vector.shape_cast %26 : vector<32xf32> to vector<32x1xf32>
      %cst_6 = arith.constant 0.00260416674 : f32
      %28 = vector.broadcast %cst_6 : f32 to vector<32x1xf32>
      %29 = arith.mulf %27, %28 : vector<32x1xf32>
      %30 = vector.broadcast %29 : vector<32x1xf32> to vector<32x384xf32>
      %31 = arith.subf %19, %30 : vector<32x384xf32>
      %32 = vector.broadcast %29 : vector<32x1xf32> to vector<32x384xf32>
      %33 = arith.subf %19, %32 : vector<32x384xf32>
      %34 = arith.mulf %31, %33 : vector<32x384xf32>
      %c0_7 = arith.constant 0 : index
      %c0_8 = arith.constant 0 : index
      %c0_9 = arith.constant 0 : index
      %c0_10 = arith.constant 0 : index
      %35 = vector.load %arg4[%c0_7, %c0_8, %c0_9, %c0_10] : memref<1x1x32x1xf32, #tpu.memory_space<vmem>>, vector<1x1x32x1xf32>
      %36 = vector.shape_cast %35 : vector<1x1x32x1xf32> to vector<32x1xf32>
      %37 = vector.shape_cast %27 : vector<32x1xf32> to vector<1x1x32x1xf32>
      tpu.vector_store %arg4[%c0_7, %c0_8, %c0_9, %c0_10], %37 {strides = array<i32>} : memref<1x1x32x1xf32, #tpu.memory_space<vmem>>, vector<1x1x32x1xf32>,
      %cst_11 = arith.constant dense<0.000000e+00> : vector<32xf32>
      %38 = vector.multi_reduction <add>, %34, %cst_11 [1] : vector<32x384xf32> to vector<32xf32>
      %39 = vector.shape_cast %38 : vector<32xf32> to vector<32x1xf32>
      %c0_12 = arith.constant 0 : index
      %c0_13 = arith.constant 0 : index
      %c0_14 = arith.constant 0 : index
      %c0_15 = arith.constant 0 : index
      %40 = vector.load %arg5[%c0_12, %c0_13, %c0_14, %c0_15] : memref<1x1x32x1xf32, #tpu.memory_space<vmem>>, vector<1x1x32x1xf32>
      %41 = vector.shape_cast %40 : vector<1x1x32x1xf32> to vector<32x1xf32>
      %42 = vector.shape_cast %39 : vector<32x1xf32> to vector<1x1x32x1xf32>
      tpu.vector_store %arg5[%c0_12, %c0_13, %c0_14, %c0_15], %42 {strides = array<i32>} : memref<1x1x32x1xf32, #tpu.memory_space<vmem>>, vector<1x1x32x1xf32>,
    } else {
    }
    %24 = arith.extui %20 : i1 to i32
    %c0_i32_5 = arith.constant 0 : i32
    %25 = arith.cmpi ne, %24, %c0_i32_5 : i32
    scf.if %25 {
      %26 = tpu.iota {dimensions = array<i32: 1>} : vector<1x384xi32>
      %c324_i32 = arith.constant 324 : i32
      %27 = vector.broadcast %c324_i32 : i32 to vector<1x384xi32>
      %28 = arith.cmpi slt, %26, %27 : vector<1x384xi32>
      %cst = arith.constant 0.000000e+00 : f32
      %29 = vector.shape_cast %28 : vector<1x384xi1> to vector<1x384xi1>
      %30 = vector.broadcast %29 : vector<1x384xi1> to vector<32x384xi1>
      %31 = vector.broadcast %cst : f32 to vector<32x384xf32>
      %32 = arith.select %30, %19, %31 : vector<32x384xi1>, vector<32x384xf32>
      %cst_6 = arith.constant dense<0.000000e+00> : vector<32xf32>
      %33 = vector.multi_reduction <add>, %32, %cst_6 [1] : vector<32x384xf32> to vector<32xf32>
      %34 = vector.shape_cast %33 : vector<32xf32> to vector<32x1xf32>
      %cst_7 = arith.constant 0.00308641978 : f32
      %35 = vector.broadcast %cst_7 : f32 to vector<32x1xf32>
      %36 = arith.mulf %34, %35 : vector<32x1xf32>
      %37 = vector.broadcast %36 : vector<32x1xf32> to vector<32x384xf32>
      %38 = arith.subf %19, %37 : vector<32x384xf32>
      %39 = vector.broadcast %36 : vector<32x1xf32> to vector<32x384xf32>
      %40 = arith.subf %19, %39 : vector<32x384xf32>
      %41 = arith.mulf %38, %40 : vector<32x384xf32>
      %cst_8 = arith.constant 0.000000e+00 : f32
      %42 = vector.shape_cast %28 : vector<1x384xi1> to vector<1x384xi1>
      %43 = vector.broadcast %42 : vector<1x384xi1> to vector<32x384xi1>
      %44 = vector.broadcast %cst_8 : f32 to vector<32x384xf32>
      %45 = arith.select %43, %41, %44 : vector<32x384xi1>, vector<32x384xf32>
      %c0_9 = arith.constant 0 : index
      %c0_10 = arith.constant 0 : index
      %c0_11 = arith.constant 0 : index
      %c0_12 = arith.constant 0 : index
      %46 = vector.load %arg4[%c0_9, %c0_10, %c0_11, %c0_12] : memref<1x1x32x1xf32, #tpu.memory_space<vmem>>, vector<1x1x32x1xf32>
      %47 = vector.shape_cast %46 : vector<1x1x32x1xf32> to vector<32x1xf32>
      %48 = vector.shape_cast %34 : vector<32x1xf32> to vector<1x1x32x1xf32>
      tpu.vector_store %arg4[%c0_9, %c0_10, %c0_11, %c0_12], %48 {strides = array<i32>} : memref<1x1x32x1xf32, #tpu.memory_space<vmem>>, vector<1x1x32x1xf32>,
      %cst_13 = arith.constant dense<0.000000e+00> : vector<32xf32>
      %49 = vector.multi_reduction <add>, %45, %cst_13 [1] : vector<32x384xf32> to vector<32xf32>
      %50 = vector.shape_cast %49 : vector<32xf32> to vector<32x1xf32>
      %c0_14 = arith.constant 0 : index
      %c0_15 = arith.constant 0 : index
      %c0_16 = arith.constant 0 : index
      %c0_17 = arith.constant 0 : index
      %51 = vector.load %arg5[%c0_14, %c0_15, %c0_16, %c0_17] : memref<1x1x32x1xf32, #tpu.memory_space<vmem>>, vector<1x1x32x1xf32>
      %52 = vector.shape_cast %51 : vector<1x1x32x1xf32> to vector<32x1xf32>
      %53 = vector.shape_cast %50 : vector<32x1xf32> to vector<1x1x32x1xf32>
      tpu.vector_store %arg5[%c0_14, %c0_15, %c0_16, %c0_17], %53 {strides = array<i32>} : memref<1x1x32x1xf32, #tpu.memory_space<vmem>>, vector<1x1x32x1xf32>,
    } else {
    }
    return
  }
  func.func @transform_0(%arg0: i32, %arg1: i32) -> (i32, i32, i32) {
    %c0_i32 = arith.constant 0 : i32
    %c0_i32_0 = arith.constant 0 : i32
    return %arg0, %c0_i32, %arg1 : i32, i32, i32
  }
  func.func @transform_1(%arg0: i32, %arg1: i32) -> (i32, i32) {
    %c0_i32 = arith.constant 0 : i32
    %c0_i32_0 = arith.constant 0 : i32
    %c0_i32_1 = arith.constant 0 : i32
    return %c0_i32, %c0_i32_0 : i32, i32
  }
  func.func @transform_2(%arg0: i32, %arg1: i32) -> (i32, i32, i32, i32) {
    %c0_i32 = arith.constant 0 : i32
    %c0_i32_0 = arith.constant 0 : i32
    %c0_i32_1 = arith.constant 0 : i32
    return %arg0, %arg1, %c0_i32, %c0_i32_0 : i32, i32, i32, i32
  }
  func.func @transform_3(%arg0: i32, %arg1: i32) -> (i32, i32, i32, i32) {
    %c0_i32 = arith.constant 0 : i32
    %c0_i32_0 = arith.constant 0 : i32
    %c0_i32_1 = arith.constant 0 : i32
    return %arg0, %arg1, %c0_i32, %c0_i32_0 : i32, i32, i32, i32
  }
}

</mosaic_0001>

<bundles_post_ra>
// kernel: tpu_custom_call.1
= control target key start
LH: loop header
LB: loop body
LE: loop exit
PB: predicated region body
PF: predicated region fallthrough
CT: control target
= control target key end

     0   :  { %s853_s12 = smov 0   ;;  %s855_s13 = smov 0   ;;  %s969_s0 = inlined_call_operand.vmem [shape: f32[2,3,324], index: 0, kind: input, shape index: {}]   ;;  %s970_s1 = inlined_call_operand.vmem [shape: f32[32,3], index: 1, kind: input, shape index: {}]   ;;  %s971_s2 = inlined_call_operand.vmem [shape: f32[2,1,32,1], index: 2, kind: output, shape index: {0}]   ;;  %s972_s3 = inlined_call_operand.vmem [shape: f32[2,1,32,1], index: 3, kind: output, shape index: {1}]  }
   0x1   :  { %s857_s14 = smov 0  }
   0x2 LB: > { %s26_s15 = sadd.s32 1, %s824_s13  ;;  %p762_p0 = scmp.ge.s32.totalorder %s828_s14, 1  ;;  %s828_s14 = sphi %s857_s14, %s14_s14   ;;  %s824_s13 = sphi %s855_s13, %s974_s13   ;;  %s820_s12 = sphi %s853_s12, %s973_s12  }
   0x3   : > { %p28_p1 = scmp.ge.s32.totalorder %s26_s15, 2  ;;  %p163_p2 = scmp.lt.s32.totalorder %s828_s14, 3 }
   0x5   : > { %s976_s15 = smov (%p28_p1, %s26_s15), 0  ;;  %p164_p3 = pnand %p762_p0, %p163_p2 }
   0x6   : > { %v236_v0 = vld [vmem:[%s970_s1 + $0x10] sm:$0xff] (!%p164_p3)  ;;  %v234_v1 = vld [vmem:[%s970_s1] sm:$0xff] (!%p164_p3)  ;;  %v830_v2 = vmov (!%p164_p3), 0   ;;  %v237_v3 = vld [vmem:[%s970_s1 + $0x18] sm:$0xff] (!%p164_p3)  ;;  %v831_v5 = vmov (!%p164_p3), 1   ;;  %v832_v6 = vmov (!%p164_p3), 2   ;;  %v260_v7 = vlaneseq (!%p164_p3) }
   0x7   : > { %167 = sbr.rel (%p164_p3) target bundleno = 466 (0x1d2), region = 28  ;;  %801 = vset.pattern.permute.xlu1 (!%p164_p3), %v830_v2  ;;  %800 = vset.pattern.permute.xlu0 (!%p164_p3), %v830_v2  ;;  %v235_v4 = vld [vmem:[%s970_s1 + $0x8] sm:$0xff] (!%p164_p3)  ;;  %p205_p4 = scmp.lt.s32.totalorder (!%p164_p3), %s820_s12, 1  ;;  %vm591_vm1 = vcmask (!%p164_p3), 7168  }
   0x8   : > { %250 = vperm.xlu1 (!%p164_p3), %801, %v236_v0   ;;  %240 = vperm.xlu0 (!%p164_p3), %800, %v234_v1   ;;  %v261_v8 = vshrl.u32 (!%p164_p3), %v260_v7, 7  ;;  %v511_v25 = vand.u32 (!%p164_p3), 127, %v260_v7 }
   0xa   : > { %v262_v9 = vsub.s32 (!%p164_p3), 0, %v261_v8  ;;  %v266_v10 = vsub.s32 (!%p164_p3), 4, %v261_v8  ;;  %v317_v14 = vsub.s32 (!%p164_p3), 1, %v261_v8  ;;  %v321_v15 = vsub.s32 (!%p164_p3), 5, %v261_v8 }
   0xb   : > { %v384_v18 = vsub.s32 (!%p164_p3), 2, %v261_v8  ;;  %v388_v19 = vsub.s32 (!%p164_p3), 6, %v261_v8  ;;  %v895_v35 = vadd.s32 (!%p164_p3), 256, %v511_v25 }
   0xc   : > { %255 = vperm.xlu1 (!%p164_p3), %801, %v237_v3   ;;  %245 = vperm.xlu0 (!%p164_p3), %800, %v235_v4  }
   0xd   : > { %vm516_vm0 = vcmp.lt.s32.totalorder (!%p164_p3), %v895_v35, 324 }
   0xe   : > { %s978_s12 = smov (!%p205_p4, %s820_s12), 1 }
   0xf   : > { %s772_s24 = smul.u32 12, %s978_s12  ;;  %s770_s28 = sshll.u32 %s978_s12, 5 }
  0x10   : > { %803 = vset.pattern.permute.xlu1 %v831_v5  ;;  %802 = vset.pattern.permute.xlu0 %v831_v5  ;;  %s933_s4 = scalar_lea.vmem %s971_s2, %s770_s28  ;;  %s231_s7 = scalar_lea.vmem %s972_s3, %s770_s28 }
  0x11   : > { %304 = vperm.xlu1 %803, %v235_v4   ;;  %300 = vperm.xlu0 %802, %v234_v1   ;;  %s212_s27 = scalar_lea.vmem %s969_s0, %s772_s24 }
  0x12   : > { %v232_v12 = vld [vmem:[%s212_s27] sm:$0x77]  ;;  %v233_v16 = vld [vmem:[%s212_s27 + $0x8] sm:$0x7] }
  0x13   : > { %v263_v17 = vrot.slane %v232_v12, %v262_v9  ;;  %v267_v20 = vrot.slane %v232_v12, %v266_v10  ;;  %v318_v23 = vrot.slane %v232_v12, %v317_v14  ;;  %v322_v24 = vrot.slane %v232_v12, %v321_v15 }
  0x14   : > { %v326_v26 = vrot.slane %v233_v16, %v317_v14  ;;  %v271_v27 = vrot.slane %v233_v16, %v262_v9  ;;  %v385_v29 = vrot.slane %v232_v12, %v384_v18  ;;  %v389_v30 = vrot.slane %v232_v12, %v388_v19 }
  0x15   : > { %308 = vperm.xlu1 %803, %v236_v0   ;;  %312 = vperm.xlu0 %802, %v237_v3   ;;  %v278_v28 = vrot.slane %v263_v17, %v262_v9  ;;  %v393_v31 = vrot.slane %v233_v16, %v384_v18  ;;  %v282_v32 = vrot.slane %v267_v20, %v262_v9 }
  0x16   : > { %v333_v33 = vrot.slane %v318_v23, %v317_v14  ;;  %v337_v34 = vrot.slane %v322_v24, %v317_v14  ;;  %v341_v37 = vrot.slane %v326_v26, %v317_v14  ;;  %v286_v39 = vrot.slane %v271_v27, %v262_v9 }
  0x17   : > { %v897_v40 = vrot.slane %v385_v29, %v384_v18  ;;  %v899_v41 = vrot.slane %v389_v30, %v384_v18  ;;  %v901_v42 = vrot.slane %v393_v31, %v384_v18 }
  0x19   : > { %804 = vset.pattern.permute.xlu1 %v832_v6  ;;  %805 = vset.pattern.permute.xlu0 %v832_v6 }
  0x1a   : > { %367 = vperm.xlu1 %804, %v234_v1   ;;  %371 = vperm.xlu0 %805, %v235_v4  }
  0x1e   : > { %375 = vperm.xlu1 %804, %v236_v0  }
  0x22   : > { %379 = vperm.xlu1 %804, %v237_v3  }
  0x87   : > { %v251_v11 = vpop.permute.xlu1 %250  ;;  %v241_v13 = vpop.permute.xlu0 %240 }
  0x88   : > { %v293_v43 = vmul.f32 %v278_v28, %v251_v11  ;;  %v294_v44 = vmul.f32 %v282_v32, %v251_v11  ;;  %v295_v53 = vmul.f32 %v286_v39, %v251_v11  ;;  %v287_v54 = vmul.f32 %v278_v28, %v241_v13 }
  0x89   : > { %v288_v57 = vmul.f32 %v282_v32, %v241_v13  ;;  %v289_v58 = vmul.f32 %v286_v39, %v241_v13 }
  0x8b   : > { %v893_v21 = vpop.permute.xlu1 %255  ;;  %v246_v22 = vpop.permute.xlu0 %245 }
  0x8c   : > { %v290_v55 = vmul.f32 %v278_v28, %v246_v22  ;;  %v291_v56 = vmul.f32 %v282_v32, %v246_v22  ;;  %v296_v59 = vmul.f32 %v278_v28, %v893_v21  ;;  %v292_v60 = vmul.f32 %v286_v39, %v246_v22 }
  0x8d   : > { %v297_v61 = vmul.f32 %v282_v32, %v893_v21 }
  0x90   : > { %v305_v36 = vpop.permute.xlu1 %304  ;;  %v301_v38 = vpop.permute.xlu0 %300 }
  0x91   : > { %v345_v45 = vmul.f32 %v333_v33, %v305_v36  ;;  %v346_v46 = vmul.f32 %v337_v34, %v305_v36  ;;  %v347_v47 = vmul.f32 %v341_v37, %v305_v36  ;;  %v342_v48 = vmul.f32 %v333_v33, %v301_v38 }
  0x92   : > { %v343_v49 = vmul.f32 %v337_v34, %v301_v38  ;;  %v344_v50 = vmul.f32 %v341_v37, %v301_v38 }
  0x93   : > { %v357_v62 = vadd.f32 %v345_v45, %v290_v55  ;;  %v358_v63 = vadd.f32 %v346_v46, %v291_v56  ;;  %v359_v1 = vadd.f32 %v347_v47, %v292_v60  ;;  %v354_v2 = vadd.f32 %v342_v48, %v287_v54 }
  0x94   : > { %v309_v51 = vpop.permute.xlu1 %308  ;;  %v313_v52 = vpop.permute.xlu0 %312  ;;  %v355_v3 = vadd.f32 %v343_v49, %v288_v57  ;;  %v356_v4 = vadd.f32 %v344_v50, %v289_v58 }
  0x95   : > { %v348_v0 = vmul.f32 %v333_v33, %v309_v51  ;;  %v349_v5 = vmul.f32 %v337_v34, %v309_v51  ;;  %v350_v6 = vmul.f32 %v341_v37, %v309_v51  ;;  %v351_v7 = vmul.f32 %v333_v33, %v313_v52 }
  0x96   : > { %v352_v8 = vmul.f32 %v337_v34, %v313_v52  ;;  %v353_v16 = vmul.f32 %v341_v37, %v313_v52  ;;  %v298_v33 = vmul.f32 %v286_v39, %v893_v21 }
  0x97   : > { %v360_v15 = vadd.f32 %v348_v0, %v293_v43  ;;  %v361_v24 = vadd.f32 %v349_v5, %v294_v44  ;;  %v362_v25 = vadd.f32 %v350_v6, %v295_v53  ;;  %v363_v38 = vadd.f32 %v351_v7, %v296_v59 }
  0x98   : > { %v364_v46 = vadd.f32 %v352_v8, %v297_v61  ;;  %v365_v47 = vadd.f32 %v353_v16, %v298_v33 }
  0x99   : > { %v368_v9 = vpop.permute.xlu1 %367  ;;  %v372_v10 = vpop.permute.xlu0 %371 }
  0x9a   : > { %v409_v11 = vmul.f32 %v897_v40, %v368_v9  ;;  %v410_v12 = vmul.f32 %v899_v41, %v368_v9  ;;  %v411_v13 = vmul.f32 %v901_v42, %v368_v9  ;;  %v412_v14 = vmul.f32 %v897_v40, %v372_v10 }
  0x9b   : > { %v413_v17 = vmul.f32 %v899_v41, %v372_v10  ;;  %v414_v18 = vmul.f32 %v901_v42, %v372_v10 }
  0x9c   : > { %v424_v19 = vadd.f32 %v412_v14, %v357_v62  ;;  %v421_v20 = vadd.f32 %v409_v11, %v354_v2  ;;  %v422_v22 = vadd.f32 %v410_v12, %v355_v3  ;;  %v423_v23 = vadd.f32 %v411_v13, %v356_v4 }
  0x9d   : > { %v376_v26 = vpop.permute.xlu1 %375  ;;  %v425_v27 = vadd.f32 %v413_v17, %v358_v63  ;;  %v426_v28 = vadd.f32 %v414_v18, %v359_v1 }
  0x9e   : > { %v415_v29 = vmul.f32 %v897_v40, %v376_v26  ;;  %v416_v30 = vmul.f32 %v899_v41, %v376_v26  ;;  %v417_v31 = vmul.f32 %v901_v42, %v376_v26  ;;  %v525_v32 = vsel %vm516_vm0, %v423_v23, 0.0 }
  0x9f   : > { %v528_v34 = vsel %vm516_vm0, %v426_v28, 0.0  ;;  %v539_v36 = vadd.f32 %v425_v27, %v424_v19  ;;  %v535_v37 = vadd.f32 %v422_v22, %v421_v20 }
  0xa0   : > { %v427_v43 = vadd.f32 %v415_v29, %v360_v15  ;;  %v428_v44 = vadd.f32 %v416_v30, %v361_v24  ;;  %v429_v45 = vadd.f32 %v417_v31, %v362_v25 }
  0xa1   : > { %v380_v48 = vpop.permute.xlu1 %379  ;;  %v540_v49 = vadd.f32 %v539_v36, %v528_v34  ;;  %v536_v50 = vadd.f32 %v535_v37, %v525_v32 }
  0xa2   : > { %v418_v51 = vmul.f32 %v897_v40, %v380_v48  ;;  %v419_v52 = vmul.f32 %v899_v41, %v380_v48  ;;  %v420_v21 = vmul.f32 %v901_v42, %v380_v48  ;;  %v531_v39 = vsel %vm516_vm0, %v429_v45, 0.0 }
  0xa3   : > { %541 = vadd.xlane.f32.xlu1 %v540_v49  ;;  %537 = vadd.xlane.f32.xlu0 %v536_v50  ;;  %v543_v53 = vadd.f32 %v428_v44, %v427_v43 }
  0xa4   : > { %v430_v54 = vadd.f32 %v418_v51, %v363_v38  ;;  %v431_v55 = vadd.f32 %v419_v52, %v364_v46  ;;  %v432_v56 = vadd.f32 %v420_v21, %v365_v47 }
  0xa5   : > { %v544_v57 = vadd.f32 %v543_v53, %v531_v39 }
  0xa6   : > { %v534_v58 = vsel %vm516_vm0, %v432_v56, 0.0  ;;  %v547_v40 = vadd.f32 %v431_v55, %v430_v54 }
  0xa7   : > { %545 = vadd.xlane.f32.xlu0 %v544_v57 }
  0xa8   : > { %v548_v59 = vadd.f32 %v547_v40, %v534_v58 }
  0xab   : > { %549 = vadd.xlane.f32.xlu0 %v548_v59 }
 0x130   : > { %v542_v41 = vpop.xlane.xlu1 %541  ;;  %v538_v42 = vpop.xlane.xlu0 %537 }
 0x131   : > { %v552_v60 = vmul.f32 0.0030864198, %v542_v41  ;;  %593 = vst.msk [vmem:[%s933_s4 + $0x8] sm:$0xff] %vm591_vm1, %v542_v41  ;;  %v551_v61 = vmul.f32 0.0030864198, %v538_v42  ;;  %592 = vst.msk [vmem:[%s933_s4] sm:$0xff] %vm591_vm1, %v538_v42 }
 0x133   : > { %v558_v62 = vsub.f32 %v424_v19, %v552_v60  ;;  %v559_v63 = vsub.f32 %v425_v27, %v552_v60  ;;  %v560_v0 = vsub.f32 %v426_v28, %v552_v60  ;;  %v555_v1 = vsub.f32 %v421_v20, %v551_v61 }
 0x134   : > { %v546_v2 = vpop.xlane.xlu0 %545  ;;  %v556_v3 = vsub.f32 %v422_v22, %v551_v61  ;;  %v557_v4 = vsub.f32 %v423_v23, %v551_v61 }
 0x135   : > { %v553_v5 = vmul.f32 0.0030864198, %v546_v2  ;;  %594 = vst.msk [vmem:[%s933_s4 + $0x10] sm:$0xff] %vm591_vm1, %v546_v2  ;;  %v570_v6 = vmul.f32 %v558_v62, %v558_v62  ;;  %v571_v7 = vmul.f32 %v559_v63, %v559_v63  ;;  %v572_v8 = vmul.f32 %v560_v0, %v560_v0 }
 0x136   : > { %v567_v9 = vmul.f32 %v555_v1, %v555_v1  ;;  %v568_v10 = vmul.f32 %v556_v3, %v556_v3  ;;  %v569_v11 = vmul.f32 %v557_v4, %v557_v4 }
 0x137   : > { %v584_v12 = vsel %vm516_vm0, %v572_v8, 0.0  ;;  %v600_v13 = vadd.f32 %v571_v7, %v570_v6  ;;  %v561_v14 = vsub.f32 %v427_v43, %v553_v5  ;;  %v562_v15 = vsub.f32 %v428_v44, %v553_v5 }
 0x138   : > { %v550_v16 = vpop.xlane.xlu0 %549  ;;  %v581_v17 = vsel %vm516_vm0, %v569_v11, 0.0  ;;  %v596_v18 = vadd.f32 %v568_v10, %v567_v9  ;;  %v563_v19 = vsub.f32 %v429_v45, %v553_v5 }
 0x139   : > { %v554_v20 = vmul.f32 0.0030864198, %v550_v16  ;;  %595 = vst.msk [vmem:[%s933_s4 + $0x18] sm:$0xff] %vm591_vm1, %v550_v16  ;;  %v601_v22 = vadd.f32 %v600_v13, %v584_v12  ;;  %v573_v23 = vmul.f32 %v561_v14, %v561_v14  ;;  %v574_v24 = vmul.f32 %v562_v15, %v562_v15 }
 0x13a   : > { %v597_v25 = vadd.f32 %v596_v18, %v581_v17  ;;  %v575_v26 = vmul.f32 %v563_v19, %v563_v19 }
 0x13b   : > { %602 = vadd.xlane.f32.xlu0 %v601_v22  ;;  %v604_v27 = vadd.f32 %v574_v24, %v573_v23  ;;  %v564_v28 = vsub.f32 %v430_v54, %v554_v20  ;;  %v565_v29 = vsub.f32 %v431_v55, %v554_v20  ;;  %v566_v30 = vsub.f32 %v432_v56, %v554_v20 }
 0x13c   : > { %598 = vadd.xlane.f32.xlu1 %v597_v25  ;;  %v587_v31 = vsel %vm516_vm0, %v575_v26, 0.0 }
 0x13d   : > { %v605_v32 = vadd.f32 %v604_v27, %v587_v31  ;;  %v576_v33 = vmul.f32 %v564_v28, %v564_v28  ;;  %v577_v34 = vmul.f32 %v565_v29, %v565_v29  ;;  %v578_v36 = vmul.f32 %v566_v30, %v566_v30 }
 0x13f   : > { %v590_v37 = vsel %vm516_vm0, %v578_v36, 0.0  ;;  %v608_v38 = vadd.f32 %v577_v34, %v576_v33 }
 0x140   : > { %606 = vadd.xlane.f32.xlu1 %v605_v32 }
 0x141   : > { %v609_v43 = vadd.f32 %v608_v38, %v590_v37 }
 0x143   : > { %610 = vadd.xlane.f32.xlu0 %v609_v43 }
 0x1c8   : > { %v603_v44 = vpop.xlane.xlu0 %602 }
 0x1c9   : > { %v599_v45 = vpop.xlane.xlu1 %598  ;;  %613 = vst.msk [vmem:[%s231_s7 + $0x8] sm:$0xff] %vm591_vm1, %v603_v44 }
 0x1ca   : > { %612 = vst.msk [vmem:[%s231_s7] sm:$0xff] %vm591_vm1, %v599_v45 }
 0x1cd   : > { %v607_v46 = vpop.xlane.xlu1 %606 }
 0x1ce   : > { %614 = vst.msk [vmem:[%s231_s7 + $0x10] sm:$0xff] %vm591_vm1, %v607_v46 }
 0x1d0   : > { %v611_v35 = vpop.xlane.xlu0 %610 }
 0x1d1   : > { %615 = vst.msk [vmem:[%s231_s7 + $0x18] sm:$0xff] %vm591_vm1, %v611_v35 }
 0x1d2 PF: > { %s14_s14 = sadd.s32 1, %s828_s14   ;;  %s973_s12 = smov %s824_s13 }
 0x1d3   : > { %p11_p5 = scmp.ge.s32.totalorder %s14_s14, 4   ;;  %s974_s13 = smov %s976_s15 }
 0x1d5   :  { %13 = sbr.rel (!%p11_p5) target bundleno = 2 (0x2), region = 78 }

</bundles_post_ra>
